<compile_context>
chip_gen: v7x
topology: tpu7x:2x2x1
jax: 0.10.0
libtpu: 0.0.40
codegen_flags: <defaults>
</compile_context>

<pallas_src>
import jax
import jax.numpy as jnp
import numpy as np
from jax.experimental import pallas as pl
from jax.experimental.pallas import tpu as pltpu


def _cca_kernel(x1_ref, x2_ref, w1t_ref, w2t_ref, b_ref,
                out1_ref, out2_ref, attn_ref):
    x1 = x1_ref[...]                                      # (TB, C)
    x2 = x2_ref[...]                                      # (TB, C)

    # conv1x1 over concat([x1, x2]) == x1 @ W1^T + x2 @ W2^T + b (two MXU matmuls).
    x = (jnp.dot(x1, w1t_ref[...], preferred_element_type=jnp.float32)
         + jnp.dot(x2, w2t_ref[...], preferred_element_type=jnp.float32)
         + b_ref[...])                                    # (TB, C)

    # energy[b, i, j] = x[b, i] * x[b, j]; the per-row max of the outer product
    # is max(x_i * max_j x_j, x_i * min_j x_j) -- exact, and avoids a second
    # (TB, C, C) temporary for the raw energy.
    xmax = jnp.max(x, axis=-1, keepdims=True)             # (TB, 1)
    xmin = jnp.min(x, axis=-1, keepdims=True)             # (TB, 1)
    m = jnp.maximum(x * xmax, x * xmin)                   # (TB, C) row max of energy

    e = jnp.exp(x[:, :, None] * x[:, None, :] - m[:, :, None])   # (TB, C, C)
    denom = jnp.sum(e, axis=-1, keepdims=True)                   # (TB, C, 1)
    inv = pl.reciprocal(denom, approx=False)                     # exact, EUP slot
    attn = e * inv                                               # (TB, C, C)
    attn_ref[...] = attn

    # out_k = attn @ x_k + x_k. Broadcast-multiply + lane reduce; negligible next
    # to the attn HBM store, and the outputs stay lane-dense (TB, C) blocks.
    out1_ref[...] = jnp.sum(attn * x1[:, None, :], axis=-1) + x1
    out2_ref[...] = jnp.sum(attn * x2[:, None, :], axis=-1) + x2


def _pick_batch_tile(B, C, vmem_budget_bytes=12 * 1024 * 1024):
    """Batch tile: multiple of 8 (sublane rule) dividing B, sized so the live
    f32 (TB, C, C) tensors per step (exp temp, attn value, 2x-buffered attn out
    block + slack) stay within a conservative scoped-VMEM budget safe on
    v5e (16 MiB default) / v6e (32 MiB) / v7x (32 of 64 MiB physical)."""
    if B <= 8 or B % 8 != 0:
        return B
    per_batch = 5 * C * C * 4
    tb = 8
    while tb * 2 <= B and B % (tb * 2) == 0 and (tb * 2) * per_batch <= vmem_budget_bytes:
        tb *= 2
    return tb


def channel_cross_attention(x1, x2, w, b, *, batch_tile=None):
    """x1, x2: (B, C) f32. w: (C, 2C) squeezed conv1x1 weight. b: (C,)."""
    B, C = x1.shape

    # Wrapper-side prep (one-off in XLA) so the kernel does no transposes:
    w1t = jnp.transpose(w[:, :C])               # (C, C) acts on x1
    w2t = jnp.transpose(w[:, C:])               # (C, C) acts on x2
    b2 = b.reshape(1, C)

    TB = batch_tile if batch_tile is not None else _pick_batch_tile(B, C)
    assert B % TB == 0 and (TB == B or TB % 8 == 0), "bad batch tile"
    grid = (B // TB,)

    out1, out2, attn = pl.pallas_call(
        _cca_kernel,
        out_shape=(
            jax.ShapeDtypeStruct((B, C), jnp.float32),
            jax.ShapeDtypeStruct((B, C), jnp.float32),
            jax.ShapeDtypeStruct((B, C, C), jnp.float32),
        ),
        grid=grid,
        in_specs=[
            pl.BlockSpec((TB, C), lambda i: (i, 0)),        # x1 tile
            pl.BlockSpec((TB, C), lambda i: (i, 0)),        # x2 tile
            pl.BlockSpec((C, C), lambda i: (0, 0)),         # w1t (resident)
            pl.BlockSpec((C, C), lambda i: (0, 0)),         # w2t (resident)
            pl.BlockSpec((1, C), lambda i: (0, 0)),         # bias (resident)
        ],
        out_specs=(
            pl.BlockSpec((TB, C), lambda i: (i, 0)),        # out1
            pl.BlockSpec((TB, C), lambda i: (i, 0)),        # out2
            pl.BlockSpec((TB, C, C), lambda i: (i, 0, 0)),  # attn
        ),
        compiler_params=pltpu.CompilerParams(
            # Batch axis is independent -> "parallel" (megacore sharding on v7x).
            dimension_semantics=("parallel",)),
    )(x1, x2, w1t, w2t, b2)

    return out1, out2, attn


def _reference(x1, x2, w, b):
    x12 = jnp.concatenate([x1, x2], axis=1)
    x = x12 @ w.T + b[None, :]
    energy = x[:, :, None] * x[:, None, :]
    attn = jax.nn.softmax(energy, axis=-1)
    out1 = jnp.einsum("bij,bj->bi", attn, x1) + x1
    out2 = jnp.einsum("bij,bj->bi", attn, x2) + x2
    return out1, out2, attn


def _run_case(key, B, C, batch_tile=None):
    k1, k2, k3, k4 = jax.random.split(key, 4)
    x1 = jax.random.normal(k1, (B, C), dtype=jnp.float32)
    x2 = jax.random.normal(k2, (B, C), dtype=jnp.float32)

    # Conv2d(in=2C, out=C, kernel=1): weight (C, 2C, 1, 1) -> squeezed to (C, 2C);
    # deterministic init mimicking PyTorch's uniform(-1/sqrt(fan_in), 1/sqrt(fan_in)).
    fan_in = 2 * C
    bound = 1.0 / np.sqrt(fan_in)
    w = jax.random.uniform(k3, (C, 2 * C), dtype=jnp.float32,
                           minval=-bound, maxval=bound)
    b = jax.random.uniform(k4, (C,), dtype=jnp.float32,
                           minval=-bound, maxval=bound)

    out1, out2, attn = channel_cross_attention(x1, x2, w, b, batch_tile=batch_tile)
    jax.block_until_ready((out1, out2, attn))

    r1, r2, ra = _reference(x1, x2, w, b)
    np.testing.assert_allclose(np.asarray(out1), np.asarray(r1), rtol=1e-5, atol=1e-5)
    np.testing.assert_allclose(np.asarray(out2), np.asarray(r2), rtol=1e-5, atol=1e-5)
    np.testing.assert_allclose(np.asarray(attn), np.asarray(ra), rtol=1e-5, atol=1e-5)


if __name__ == "__main__":
    key = jax.random.PRNGKey(0)
    k_a, k_b = jax.random.split(key)

    # Small config matching the module spec (in_dim = 8), single grid step.
    _run_case(k_a, B=2, C=8)
    # Slightly larger config exercising the batch-tiled 2-step "parallel" grid.
    _run_case(k_b, B=16, C=16, batch_tile=8)

    print("KERNEL_OK")
</pallas_src>

<mosaic_0001>
module attributes {stable_mosaic.version = 11 : i64} {
  func.func @_cca_kernel(%arg0: i32, %arg1: memref<2x8xf32, #tpu.memory_space<vmem>>, %arg2: memref<2x8xf32, #tpu.memory_space<vmem>>, %arg3: memref<8x8xf32, #tpu.memory_space<vmem>>, %arg4: memref<8x8xf32, #tpu.memory_space<vmem>>, %arg5: memref<1x8xf32, #tpu.memory_space<vmem>>, %arg6: memref<2x8xf32, #tpu.memory_space<vmem>>, %arg7: memref<2x8xf32, #tpu.memory_space<vmem>>, %arg8: memref<2x8x8xf32, #tpu.memory_space<vmem>>) attributes {dimension_semantics = [#tpu.dimension_semantics<parallel>], iteration_bounds = array<i64: 1>, scalar_prefetch = 0 : i64, scratch_operands = 0 : i64, tpu.core_type = #tpu.core_type<tc>, window_params = [{transform_indices = @transform_0, window_bounds = array<i64: 2, 8>}, {transform_indices = @transform_1, window_bounds = array<i64: 2, 8>}, {pipeline_mode = #tpu.pipeline_mode<synchronous>, transform_indices = @transform_2, window_bounds = array<i64: 8, 8>}, {pipeline_mode = #tpu.pipeline_mode<synchronous>, transform_indices = @transform_3, window_bounds = array<i64: 8, 8>}, {pipeline_mode = #tpu.pipeline_mode<synchronous>, transform_indices = @transform_4, window_bounds = array<i64: 1, 8>}, {transform_indices = @transform_5, window_bounds = array<i64: 2, 8>}, {transform_indices = @transform_6, window_bounds = array<i64: 2, 8>}, {transform_indices = @transform_7, window_bounds = array<i64: 2, 8, 8>}]} {
    %c0 = arith.constant 0 : index
    %c0_0 = arith.constant 0 : index
    %0 = vector.load %arg1[%c0, %c0_0] : memref<2x8xf32, #tpu.memory_space<vmem>>, vector<2x8xf32>
    %c0_1 = arith.constant 0 : index
    %c0_2 = arith.constant 0 : index
    %1 = vector.load %arg2[%c0_1, %c0_2] : memref<2x8xf32, #tpu.memory_space<vmem>>, vector<2x8xf32>
    %c0_3 = arith.constant 0 : index
    %c0_4 = arith.constant 0 : index
    %2 = vector.load %arg3[%c0_3, %c0_4] : memref<8x8xf32, #tpu.memory_space<vmem>>, vector<8x8xf32>
    %cst = arith.constant dense<0.000000e+00> : vector<2x8xf32>
    %3 = tpu.matmul %0, %2, %cst {dimension_numbers = #tpu.dot_dimension_numbers<[1], [0], [0], [1], [0, 0, 1, 1], [], []>} : vector<2x8xf32>, vector<8x8xf32>, vector<2x8xf32> -> vector<2x8xf32>
    %c0_5 = arith.constant 0 : index
    %c0_6 = arith.constant 0 : index
    %4 = vector.load %arg4[%c0_5, %c0_6] : memref<8x8xf32, #tpu.memory_space<vmem>>, vector<8x8xf32>
    %cst_7 = arith.constant dense<0.000000e+00> : vector<2x8xf32>
    %5 = tpu.matmul %1, %4, %cst_7 {dimension_numbers = #tpu.dot_dimension_numbers<[1], [0], [0], [1], [0, 0, 1, 1], [], []>} : vector<2x8xf32>, vector<8x8xf32>, vector<2x8xf32> -> vector<2x8xf32>
    %6 = arith.addf %3, %5 : vector<2x8xf32>
    %c0_8 = arith.constant 0 : index
    %c0_9 = arith.constant 0 : index
    %7 = vector.load %arg5[%c0_8, %c0_9] : memref<1x8xf32, #tpu.memory_space<vmem>>, vector<1x8xf32>
    %8 = vector.broadcast %7 : vector<1x8xf32> to vector<2x8xf32>
    %9 = arith.addf %6, %8 : vector<2x8xf32>
    %cst_10 = arith.constant dense<0xFF800000> : vector<2xf32>
    %10 = vector.multi_reduction <maximumf>, %9, %cst_10 [1] : vector<2x8xf32> to vector<2xf32>
    %11 = vector.shape_cast %10 : vector<2xf32> to vector<2x1xf32>
    %cst_11 = arith.constant dense<0x7F800000> : vector<2xf32>
    %12 = vector.multi_reduction <minimumf>, %9, %cst_11 [1] : vector<2x8xf32> to vector<2xf32>
    %13 = vector.shape_cast %12 : vector<2xf32> to vector<2x1xf32>
    %14 = vector.broadcast %11 : vector<2x1xf32> to vector<2x8xf32>
    %15 = arith.mulf %9, %14 : vector<2x8xf32>
    %16 = vector.broadcast %13 : vector<2x1xf32> to vector<2x8xf32>
    %17 = arith.mulf %9, %16 : vector<2x8xf32>
    %18 = arith.maximumf %15, %17 : vector<2x8xf32>
    %19 = vector.shape_cast %9 : vector<2x8xf32> to vector<2x8x1xf32>
    %20 = vector.shape_cast %9 : vector<2x8xf32> to vector<2x1x8xf32>
    %21 = vector.broadcast %19 : vector<2x8x1xf32> to vector<2x8x8xf32>
    %22 = vector.broadcast %20 : vector<2x1x8xf32> to vector<2x8x8xf32>
    %23 = arith.mulf %21, %22 : vector<2x8x8xf32>
    %24 = vector.shape_cast %18 : vector<2x8xf32> to vector<2x8x1xf32>
    %25 = vector.broadcast %24 : vector<2x8x1xf32> to vector<2x8x8xf32>
    %26 = arith.subf %23, %25 : vector<2x8x8xf32>
    %27 = math.exp %26 : vector<2x8x8xf32>
    %cst_12 = arith.constant dense<0.000000e+00> : vector<2x8xf32>
    %28 = vector.multi_reduction <add>, %27, %cst_12 [2] : vector<2x8x8xf32> to vector<2x8xf32>
    %29 = vector.shape_cast %28 : vector<2x8xf32> to vector<2x8x1xf32>
    %30 = tpu.reciprocal %29 : vector<2x8x1xf32> -> vector<2x8x1xf32>
    %31 = vector.broadcast %30 : vector<2x8x1xf32> to vector<2x8x8xf32>
    %32 = arith.mulf %27, %31 : vector<2x8x8xf32>
    %c0_13 = arith.constant 0 : index
    %c0_14 = arith.constant 0 : index
    %c0_15 = arith.constant 0 : index
    %33 = vector.load %arg8[%c0_13, %c0_14, %c0_15] : memref<2x8x8xf32, #tpu.memory_space<vmem>>, vector<2x8x8xf32>
    tpu.vector_store %arg8[%c0_13, %c0_14, %c0_15], %32 {strides = array<i32>} : memref<2x8x8xf32, #tpu.memory_space<vmem>>, vector<2x8x8xf32>,
    %34 = vector.shape_cast %0 : vector<2x8xf32> to vector<2x1x8xf32>
    %35 = vector.broadcast %34 : vector<2x1x8xf32> to vector<2x8x8xf32>
    %36 = arith.mulf %32, %35 : vector<2x8x8xf32>
    %cst_16 = arith.constant dense<0.000000e+00> : vector<2x8xf32>
    %37 = vector.multi_reduction <add>, %36, %cst_16 [2] : vector<2x8x8xf32> to vector<2x8xf32>
    %38 = arith.addf %37, %0 : vector<2x8xf32>
    %c0_17 = arith.constant 0 : index
    %c0_18 = arith.constant 0 : index
    %39 = vector.load %arg6[%c0_17, %c0_18] : memref<2x8xf32, #tpu.memory_space<vmem>>, vector<2x8xf32>
    tpu.vector_store %arg6[%c0_17, %c0_18], %38 {strides = array<i32>} : memref<2x8xf32, #tpu.memory_space<vmem>>, vector<2x8xf32>,
    %40 = vector.shape_cast %1 : vector<2x8xf32> to vector<2x1x8xf32>
    %41 = vector.broadcast %40 : vector<2x1x8xf32> to vector<2x8x8xf32>
    %42 = arith.mulf %32, %41 : vector<2x8x8xf32>
    %cst_19 = arith.constant dense<0.000000e+00> : vector<2x8xf32>
    %43 = vector.multi_reduction <add>, %42, %cst_19 [2] : vector<2x8x8xf32> to vector<2x8xf32>
    %44 = arith.addf %43, %1 : vector<2x8xf32>
    %c0_20 = arith.constant 0 : index
    %c0_21 = arith.constant 0 : index
    %45 = vector.load %arg7[%c0_20, %c0_21] : memref<2x8xf32, #tpu.memory_space<vmem>>, vector<2x8xf32>
    tpu.vector_store %arg7[%c0_20, %c0_21], %44 {strides = array<i32>} : memref<2x8xf32, #tpu.memory_space<vmem>>, vector<2x8xf32>,
    return
  }
  func.func @transform_0(%arg0: i32) -> (i32, i32) {
    %c0_i32 = arith.constant 0 : i32
    %c0_i32_0 = arith.constant 0 : i32
    return %arg0, %c0_i32 : i32, i32
  }
  func.func @transform_1(%arg0: i32) -> (i32, i32) {
    %c0_i32 = arith.constant 0 : i32
    %c0_i32_0 = arith.constant 0 : i32
    return %arg0, %c0_i32 : i32, i32
  }
  func.func @transform_2(%arg0: i32) -> (i32, i32) {
    %c0_i32 = arith.constant 0 : i32
    %c0_i32_0 = arith.constant 0 : i32
    %c0_i32_1 = arith.constant 0 : i32
    return %c0_i32, %c0_i32_0 : i32, i32
  }
  func.func @transform_3(%arg0: i32) -> (i32, i32) {
    %c0_i32 = arith.constant 0 : i32
    %c0_i32_0 = arith.constant 0 : i32
    %c0_i32_1 = arith.constant 0 : i32
    return %c0_i32, %c0_i32_0 : i32, i32
  }
  func.func @transform_4(%arg0: i32) -> (i32, i32) {
    %c0_i32 = arith.constant 0 : i32
    %c0_i32_0 = arith.constant 0 : i32
    %c0_i32_1 = arith.constant 0 : i32
    return %c0_i32, %c0_i32_0 : i32, i32
  }
  func.func @transform_5(%arg0: i32) -> (i32, i32) {
    %c0_i32 = arith.constant 0 : i32
    %c0_i32_0 = arith.constant 0 : i32
    return %arg0, %c0_i32 : i32, i32
  }
  func.func @transform_6(%arg0: i32) -> (i32, i32) {
    %c0_i32 = arith.constant 0 : i32
    %c0_i32_0 = arith.constant 0 : i32
    return %arg0, %c0_i32 : i32, i32
  }
  func.func @transform_7(%arg0: i32) -> (i32, i32, i32) {
    %c0_i32 = arith.constant 0 : i32
    %c0_i32_0 = arith.constant 0 : i32
    %c0_i32_1 = arith.constant 0 : i32
    return %arg0, %c0_i32, %c0_i32_0 : i32, i32, i32
  }
}

</mosaic_0001>

<bundles_post_ra>
// kernel: tpu_custom_call.1
= control target key start
LH: loop header
LB: loop body
LE: loop exit
PB: predicated region body
PF: predicated region fallthrough
CT: control target
= control target key end

     0   :  { %13 = vsyncpa [#allocation3], 0  ;;  %s832_s0 = inlined_call_operand.hbm [shape: f32[2,8], index: 0, kind: input, shape index: {}]   ;;  %s833_s1 = inlined_call_operand.vmem [shape: f32[2,8], index: 1, kind: input, shape index: {}]   ;;  %s834_s2 = inlined_call_operand.hbm [shape: f32[8,8], index: 2, kind: input, shape index: {}]   ;;  %s835_s3 = inlined_call_operand.vmem [shape: f32[8,8], index: 3, kind: input, shape index: {}]   ;;  %s836_s4 = inlined_call_operand.vmem [shape: f32[1,8], index: 4, kind: input, shape index: {}]   ;;  %s837_s5 = inlined_call_operand.hbm [shape: f32[2,8], index: 5, kind: output, shape index: {0}]   ;;  %s838_s6 = inlined_call_operand.hbm [shape: f32[2,8], index: 6, kind: output, shape index: {1}]   ;;  %s839_s7 = inlined_call_operand.hbm [shape: f32[2,8,8], index: 7, kind: output, shape index: {2}]  }
   0x1   :  { %14 = vsyncpa [#allocation6], 0 }
   0x2   :  { %15 = vsyncpa [#allocation4], 0 }
   0x3   :  { %16 = vsyncpa [#allocation9], 0  ;;  %s657_s24 = smov [#allocation2]   ;;  %s658_s26 = smov [#allocation5]  }
   0x4   :  { %s23_s25 = sshll.u32 %s657_s24, 4  ;;  %s35_s27 = sshll.u32 %s658_s26, 4  ;;  %s24_s25 = int_to_ptr.vmem [resolvable:$true] %s23_s25  ;;  %s36_s27 = int_to_ptr.vmem [resolvable:$true] %s35_s27 }
   0x5   :  { %s539_s30 = scalar_lea.hbm %s832_s0, 32 }
   0x6   :  { %p540_p0 = scmp.ne.s32.totalorder %s832_s0, %s539_s30  ;;  %p543_p1 = scmp.lt.u32.totalorder %s539_s30, %s832_s0 }
   0x8   :  { %p545_p2 = pnand %p543_p1, %p540_p0 }
   0xa   :  { %548 = shalt.err (!%p545_p2)
}
   0xb   :  { %s549_s12 = scalar_lea.vmem %s24_s25, 32  ;;  %p554_p4 = scmp.lt.s32.totalorder %s24_s25, %s24_s25 }
   0xc   :  { %p550_p3 = scmp.ne.s32.totalorder %s24_s25, %s549_s12  ;;  %p555_p5 = scmp.lt.s32.totalorder %s549_s12, %s549_s12 }
   0xe   :  { %p556_p6 = por %p555_p5, %p554_p4 }
  0x10   :  { %p557_p7 = pnand %p556_p6, %p550_p3 }
  0x12   :  { %560 = shalt.err (!%p557_p7)
}
  0x13   :  { %26 = dma.hbm_to_vmem [thread:$0]  %s832_s0, 32, %s24_s25, [#allocation3]  }
  0x14   :  { %s561_s17 = scalar_lea.hbm %s834_s2, 128 }
  0x15   :  { %p562_p8 = scmp.ne.s32.totalorder %s834_s2, %s561_s17  ;;  %p565_p9 = scmp.lt.u32.totalorder %s561_s17, %s834_s2 }
  0x17   :  { %p567_p10 = pnand %p565_p9, %p562_p8 }
  0x19   :  { %570 = shalt.err (!%p567_p10)
}
  0x1a   :  { %s571_s22 = scalar_lea.vmem %s36_s27, 128  ;;  %p576_p12 = scmp.lt.s32.totalorder %s36_s27, %s36_s27 }
  0x1b   :  { %p572_p11 = scmp.ne.s32.totalorder %s36_s27, %s571_s22  ;;  %p577_p13 = scmp.lt.s32.totalorder %s571_s22, %s571_s22 }
  0x1d   :  { %p578_p0 = por %p577_p13, %p576_p12 }
  0x1f   :  { %p579_p1 = pnand %p578_p0, %p572_p11 }
  0x21   :  { %582 = shalt.err (!%p579_p1)
}
  0x22   :  { %38 = dma.hbm_to_vmem [thread:$0]  %s834_s2, 128, %s36_s27, [#allocation6]  }
  0x23   :  { %649 = dma.done.wait [#allocation3], 32  }
  0x24   :  { %650 = vsyncadd [#allocation3], 4294967264 }
  0x25   :  { %651 = dma.done.wait [#allocation6], 128  }
  0x26   :  { %652 = vsyncadd [#allocation6], 4294967168  ;;  %v659_v0 = vmov 0.0   ;;  %vm660_vm0 = vmmov 0   ;;  %vm53_vm1 = vcmask 64512   ;;  %v52_v1 = vld [vmem:[%s835_s3] sm:$0xff]  ;;  %v218_v5 = vlaneseq }
  0x27   :  { %508 = vmatprep.subr.mxu0 %v659_v0  ;;  %513 = vmatprep.subr.mxu1 %v659_v0  ;;  %v51_v2 = vld [vmem:[#allocation5] sm:$0xff]  ;;  %v738_v3 = vld [vmem:[%s833_s1] sm:$0x3]  ;;  %v740_v4 = vld [vmem:[#allocation2] sm:$0x3]  ;;  %vm208_vm2 = vcmask 58368  }
  0x28   :  { %510 = vmatprep.mubr.msk.f32.mxu0 %vm660_vm0, %v659_v0  ;;  %515 = vmatprep.mubr.msk.f32.mxu1 %vm660_vm0, %v659_v0  ;;  %v747_v6 = vshrl.u32 %v218_v5, 7  ;;  %v503_v9 = vld [vmem:[%s836_s4] ss:$0 sm:$0xff]  ;;  %v661_v27 = vmov 1966171168   ;;  %s663_s1 = smov [#allocation8]  }
  0x29   :  { %509 = vmatpush3.msra.mxu0 %v52_v1  ;;  %514 = vmatpush3.msra.mxu1 %v51_v2  ;;  %v234_v28 = vunpack.c.l.s4 %v661_v27  ;;  %s472_s4 = sshll.u32 %s663_s1, 4  ;;  %vm375_vm3 = vcmask 1041409   ;;  %s664_s27 = smov [#allocation10]   ;;  %s473_s4 = int_to_ptr.vmem [resolvable:$true] %s472_s4 }
  0x2a   :  { %511 = vmatmul.mubr.msk.f32.vlgmr.msra.gmra.mrb[0].mxu0 %vm53_vm1, %v738_v3  ;;  %516 = vmatmul.mubr.msk.f32.vlgmr.msra.gmra.mrb[0].mxu1 %vm53_vm1, %v740_v4  ;;  %v753_v13 = vsub.s32 0, %v747_v6  ;;  %v227_v17 = vsub.s32 1, %v747_v6  ;;  %s481_s29 = sshll.u32 %s664_s27, 4  ;;  %s583_s30 = scalar_lea.vmem %s473_s4, 32  ;;  %s786_s29 = int_to_ptr.vmem [resolvable:$true] %s481_s29 }
  0x2b   :  { %v235_v29 = vunpack.c.0.s8 %v234_v28  ;;  %p584_p2 = scmp.ne.s32.totalorder %s473_s4, %s583_s30  ;;  %p588_p3 = scmp.lt.s32.totalorder %s473_s4, %s473_s4 }
  0x2c   :  { %v429_v51 = vrot.slane %v738_v3, %v227_v17  ;;  %v422_v52 = vrot.slane %v738_v3, %v753_v13  ;;  %v349_v53 = vrot.slane %v740_v4, %v227_v17  ;;  %p589_p4 = scmp.lt.s32.totalorder %s583_s30, %s583_s30 }
  0x2d   :  { %v238_v30 = vsub.s32 %v235_v29, %v747_v6 }
  0x2e   :  { %p590_p5 = por %p589_p4, %p588_p3 }
  0x2f   :  { %v385_v55 = vrot.slane %v738_v3, %v238_v30  ;;  %v305_v59 = vrot.slane %v740_v4, %v238_v30 }
  0x30   :  { %p591_p6 = pnand %p590_p5, %p584_p2 }
  0x31   :  { %v386_v57 = vcombine.high %v385_v55, %v385_v55  ;;  %v393_v58 = vrot.slane %v385_v55, %v238_v30 }
  0x33   :  { %v400_v60 = vrot.slane %v386_v57, %v238_v30  ;;  %v404_v62 = vrot.slane %v393_v58, %v753_v13 }
  0x35   :  { %v408_v2 = vrot.slane %v400_v60, %v753_v13 }
  0xfd   :  { %v123_v7 = vpop.f32.mrb[0].mxu0  ;;  %v196_v8 = vpop.f32.mrb[0].mxu1 }
  0xfe   :  { %v197_v10 = vadd.f32 %v196_v8, %v123_v7  ;;  %v512_v11 = vpop.f32.mrb[1].mxu0  ;;  %v517_v12 = vpop.f32.mrb[1].mxu1  ;;  %v313_v7 = vrot.slane %v305_v59, %v238_v30  ;;  %v306_v8 = vcombine.high %v305_v59, %v305_v59 }
 0x100   :  { %v207_v14 = vadd.f32 %v503_v9, %v197_v10  ;;  %v324_v11 = vrot.slane %v313_v7, %v753_v13  ;;  %v320_v12 = vrot.slane %v306_v8, %v238_v30 }
 0x102   :  { %v209_v15 = vsel %vm208_vm2, %v207_v14, -inf  ;;  %v221_v16 = vrot.slane %v207_v14, %v753_v13  ;;  %v212_v18 = vsel %vm208_vm2, %v207_v14, inf  ;;  %v228_v19 = vrot.slane %v207_v14, %v227_v17 }
 0x103   :  { %210 = vmax.xlane.f32.xlu0 %v209_v15  ;;  %v239_v31 = vrot.slane %v207_v14, %v238_v30 }
 0x104   :  { %223 = vbcast.lane.b32.xlu1 %v221_v16, 256  ;;  %v328_v16 = vrot.slane %v320_v12, %v753_v13 }
 0x105   :  { %v240_v32 = vcombine.high %v239_v31, %v239_v31  ;;  %v247_v34 = vrot.slane %v239_v31, %v238_v30 }
 0x107   :  { %213 = vmin.xlane.f32.xlu0 %v212_v18  ;;  %v254_v35 = vrot.slane %v240_v32, %v238_v30  ;;  %v258_v37 = vrot.slane %v247_v34, %v753_v13  ;;  %v366_v34 = vand.u32 127, %v218_v5 }
 0x108   :  { %230 = vbcast.lane.b32.xlu1 %v228_v19, 256 }
 0x109   :  { %v262_v38 = vrot.slane %v254_v35, %v753_v13 }
 0x176   :  { %v224_v33 = vpop.permute.xlu1 %223 }
 0x177   :  { %v265_v39 = vmul.f32 %v258_v37, %v224_v33 }
 0x17a   :  { %v231_v36 = vpop.permute.xlu1 %230 }
 0x17b   :  { %v266_v40 = vmul.f32 %v262_v38, %v231_v36 }
 0x190   :  { %v211_v20 = vpop.xlane.xlu0 %210 }
 0x191   :  { %v215_v22 = vmul.f32 %v211_v20, %v207_v14  ;;  %v662_v20 = vmov 0  }
 0x192   :  { %529 = vset.pattern.permute.xlu1 %v662_v20  ;;  %530 = vset.pattern.permute.xlu0 %v662_v20 }
 0x194   :  { %v214_v21 = vpop.xlane.xlu0 %213 }
 0x195   :  { %v216_v23 = vmul.f32 %v214_v21, %v207_v14  ;;  %v342_v21 = vrot.slane %v740_v4, %v753_v13  ;;  %v369_v4 = vsub.s32 %v366_v34, %v747_v6 }
 0x197   :  { %v217_v24 = vmax.f32 %v215_v22, %v216_v23 }
 0x199   :  { %v277_v25 = vrot.slane %v217_v24, %v227_v17  ;;  %v270_v26 = vrot.slane %v217_v24, %v753_v13 }
 0x19b   :  { %279 = vbcast.lane.b32.xlu1 %v277_v25, 256  ;;  %272 = vbcast.lane.b32.xlu0 %v270_v26, 256 }
 0x20d   :  { %v280_v41 = vpop.permute.xlu1 %279  ;;  %v273_v42 = vpop.permute.xlu0 %272 }
 0x20e   :  { %v282_v43 = vsub.f32 %v266_v40, %v280_v41  ;;  %v281_v44 = vsub.f32 %v265_v39, %v273_v42 }
 0x210   :  { %v285_v45 = vmul.f32 1.442695, %v282_v43  ;;  %v283_v46 = vmul.f32 1.442695, %v281_v44 }
 0x212   :  { %531 = vpow2.f32 %v285_v45 }
 0x213   :  { %533 = vpow2.f32 %v283_v46 }
 0x21c   :  { %v532_v47 = vpop.eup %531 }
 0x21d   :  { %v534_v48 = vpop.eup %533  ;;  %v290_v49 = vsel %vm53_vm1, %v532_v47, 0.0 }
 0x21e   :  { %291 = vadd.xlane.f32.xlu0 %v290_v49  ;;  %v287_v50 = vsel %vm53_vm1, %v534_v48, 0.0 }
 0x21f   :  { %288 = vadd.xlane.f32.xlu1 %v287_v50 }
 0x230   :  { %431 = vbcast.lane.b32.xlu1 %v429_v51, 256 }
 0x234   :  { %424 = vbcast.lane.b32.xlu0 %v422_v52, 256 }
 0x238   :  { %351 = vbcast.lane.b32.xlu0 %v349_v53, 256 }
 0x2ab   :  { %v292_v54 = vpop.xlane.xlu0 %291 }
 0x2ac   :  { %v289_v56 = vpop.xlane.xlu1 %288  ;;  %535 = vrcp.f32 %v292_v54 }
 0x2ad   :  { %537 = vrcp.f32 %v289_v56 }
 0x2af   :  { %v425_v23 = vpop.permute.xlu0 %424 }
 0x2b0   :  { %v432_v22 = vpop.permute.xlu1 %431 }
 0x2b3   :  { %v352_v32 = vpop.permute.xlu0 %351 }
 0x2b6   :  { %v536_v61 = vpop.eup %535 }
 0x2b7   :  { %v538_v63 = vpop.eup %537  ;;  %v296_v0 = vmul.f32 %v536_v61, %v532_v47 }
 0x2b8   :  { %v295_v1 = vmul.f32 %v538_v63, %v534_v48 }
 0x2b9   :  { %298 = vst.msk [vmem:[#allocation10 + $0x8] sm:$0xff] %vm53_vm1, %v296_v0  ;;  %v412_v10 = vmul.f32 %v408_v2, %v296_v0  ;;  %v332_v18 = vmul.f32 %v328_v16, %v296_v0 }
 0x2ba   :  { %v411_v3 = vmul.f32 %v404_v62, %v295_v1  ;;  %297 = vst.msk [vmem:[#allocation10] sm:$0xff] %vm53_vm1, %v295_v1  ;;  %v331_v15 = vmul.f32 %v324_v11, %v295_v1 }
 0x2bb   :  { %v416_v14 = vsel %vm53_vm1, %v412_v10, 0.0  ;;  %v336_v19 = vsel %vm53_vm1, %v332_v18, 0.0 }
 0x2bc   :  { %v413_v9 = vsel %vm53_vm1, %v411_v3, 0.0  ;;  %v333_v17 = vsel %vm53_vm1, %v331_v15, 0.0 }
 0x2bd   :  { %414 = vadd.xlane.f32.xlu1 %v413_v9 }
 0x2c1   :  { %417 = vadd.xlane.f32.xlu1 %v416_v14 }
 0x2c5   :  { %334 = vadd.xlane.f32.xlu1 %v333_v17 }
 0x2c9   :  { %337 = vadd.xlane.f32.xlu1 %v336_v19 }
 0x2da   :  { %344 = vbcast.lane.b32.xlu1 %v342_v21, 256 }
 0x34a   :  { %v415_v24 = vpop.xlane.xlu1 %414 }
 0x34b   :  { %v435_v25 = vadd.f32 %v425_v23, %v415_v24 }
 0x34d   :  { %440 = vperm.xlu1 %529, %v435_v25  }
 0x34e   :  { %v418_v26 = vpop.xlane.xlu1 %417 }
 0x34f   :  { %v436_v27 = vadd.f32 %v432_v22, %v418_v26 }
 0x351   :  { %443 = vperm.xlu0 %530, %v436_v27  }
 0x352   :  { %v335_v28 = vpop.xlane.xlu1 %334 }
 0x356   :  { %v338_v29 = vpop.xlane.xlu1 %337 }
 0x357   :  { %v356_v33 = vadd.f32 %v352_v32, %v338_v29 }
 0x35a   :  { %v345_v30 = vpop.permute.xlu1 %344 }
 0x35b   :  { %v355_v31 = vadd.f32 %v345_v30, %v335_v28 }
 0x35d   :  { %360 = vperm.xlu1 %529, %v355_v31  }
 0x361   :  { %363 = vperm.xlu1 %529, %v356_v33  }
 0x3cc   :  { %v441_v13 = vpop.permute.xlu1 %440 }
 0x3cd   :  { %v448_v36 = vrot.slane %v441_v13, %v369_v4 }
 0x3d0   :  { %v444_v35 = vpop.permute.xlu0 %443 }
 0x3d1   :  { %v452_v37 = vrot.slane %v444_v35, %v369_v4 }
 0x3d3   :  { %v453_v38 = vsel %vm375_vm3, %v452_v37, %v448_v36 }
 0x3d4   :  { %455 = vst.msk [vmem:[#allocation8] sm:$0x3] %vm208_vm2, %v453_v38 }
 0x3d5   :  { %594 = shalt.err (!%p591_p6)
}
 0x3d6   :  { %s595_s10 = scalar_lea.hbm %s838_s6, 32 }
 0x3d7   :  { %p596_p7 = scmp.ne.s32.totalorder %s838_s6, %s595_s10  ;;  %p599_p8 = scmp.lt.u32.totalorder %s595_s10, %s838_s6 }
 0x3d9   :  { %p601_p9 = pnand %p599_p8, %p596_p7 }
 0x3db   :  { %604 = shalt.err (!%p601_p9)
}
 0x3dc   :  { %475 = dma.vmem_to_hbm [thread:$0]  %s473_s4, 32, %s838_s6, [#allocation9]  }
 0x3dd   :  { %s605_s17 = scalar_lea.vmem %s786_s29, 256  ;;  %p610_p11 = scmp.lt.s32.totalorder %s786_s29, %s786_s29 }
 0x3de   :  { %p606_p10 = scmp.ne.s32.totalorder %s786_s29, %s605_s17  ;;  %p611_p12 = scmp.lt.s32.totalorder %s605_s17, %s605_s17 }
 0x3e0   :  { %p612_p13 = por %p611_p12, %p610_p11 }
 0x3e2   :  { %p613_p0 = pnand %p612_p13, %p606_p10 }
 0x3e4   :  { %616 = shalt.err (!%p613_p0)
}
 0x3e5   :  { %s617_s20 = scalar_lea.hbm %s839_s7, 256 }
 0x3e6   :  { %p618_p1 = scmp.ne.s32.totalorder %s839_s7, %s617_s20  ;;  %p621_p2 = scmp.lt.u32.totalorder %s617_s20, %s839_s7 }
 0x3e8   :  { %p623_p3 = pnand %p621_p2, %p618_p1 }
 0x3ea   :  { %626 = shalt.err (!%p623_p3)
}
 0x3eb   :  { %s665_s6 = smov 128   ;;  %s666_s24 = smov 8   ;;  %v361_v5 = vpop.permute.xlu1 %360 }
 0x3ec   :  { %487 = dma.vmem_to_hbm [thread:$0]  %s786_s29, 256, %s839_s7, [#allocation9], %s665_s6, %s665_s6, %s666_s24   ;;  %v370_v39 = vrot.slane %v361_v5, %v369_v4 }
 0x3ed   :  { %s667_s28 = smov [#allocation7]  }
 0x3ee   :  { %s462_s2 = sshll.u32 %s667_s28, 4  ;;  %s463_s2 = int_to_ptr.vmem [resolvable:$true] %s462_s2 }
 0x3ef   :  { %v364_v6 = vpop.permute.xlu1 %363  ;;  %s627_s3 = scalar_lea.vmem %s463_s2, 32  ;;  %p632_p5 = scmp.lt.s32.totalorder %s463_s2, %s463_s2 }
 0x3f0   :  { %v374_v40 = vrot.slane %v364_v6, %v369_v4  ;;  %p628_p4 = scmp.ne.s32.totalorder %s463_s2, %s627_s3  ;;  %p633_p6 = scmp.lt.s32.totalorder %s627_s3, %s627_s3 }
 0x3f2   :  { %v376_v41 = vsel %vm375_vm3, %v374_v40, %v370_v39  ;;  %p634_p7 = por %p633_p6, %p632_p5 }
 0x3f3   :  { %378 = vst.msk [vmem:[#allocation7] sm:$0x3] %vm208_vm2, %v376_v41 }
 0x3f4   :  { %p635_p8 = pnand %p634_p7, %p628_p4 }
 0x3f6   :  { %638 = shalt.err (!%p635_p8)
}
 0x3f7   :  { %s639_s4 = scalar_lea.hbm %s837_s5, 32 }
 0x3f8   :  { %p640_p9 = scmp.ne.s32.totalorder %s837_s5, %s639_s4  ;;  %p643_p10 = scmp.lt.u32.totalorder %s639_s4, %s837_s5 }
 0x3fa   :  { %p645_p11 = pnand %p643_p10, %p640_p9 }
 0x3fc   :  { %648 = shalt.err (!%p645_p11)
}
 0x3fd   :  { %465 = dma.vmem_to_hbm [thread:$0]  %s463_s2, 32, %s837_s5, [#allocation4]  }
 0x3fe   :  { %653 = dma.done.wait [#allocation4], 32  }
 0x3ff   :  { %654 = vsyncadd [#allocation4], 4294967264 }
 0x400   :  { %655 = dma.done.wait [#allocation9], 288  }
 0x401   :  { %656 = vsyncadd [#allocation9], 4294967008 }
 0x402   :  { %497 = vsyncpa [#allocation3], 1 }
 0x403   :  { %498 = vsyncpa [#allocation6], 1 }
 0x404   :  { %499 = vsyncpa [#allocation4], 1 }
 0x405   :  { %500 = vsyncpa [#allocation9], 1 }

</bundles_post_ra>
